<compile_context>
chip_gen: v6e
topology: v6e:2x2x1
jax: 0.10.0
libtpu: 0.0.40
codegen_flags: <defaults>
</compile_context>

<pallas_src>
import jax
import jax.numpy as jnp
from jax.experimental import pallas as pl
from jax.experimental.pallas import tpu as pltpu


def _reasoning_components_kernel(comp_ref, reas_ref, comp_out_ref, reas_out_ref):
    # Identity forward: copy both parameter tensors through VMEM.
    comp_out_ref[...] = comp_ref[...]
    reas_out_ref[...] = reas_ref[...]


def reasoning_components_forward(components, reasonings):
    """Pallas-backed forward pass of ReasoningComponents.

    Mirrors the PyTorch module's forward(): returns (components, reasonings).

    NOTE: in a real model graph this op should simply be
    `return components, reasonings` (XLA erases it completely); the Pallas
    call exists only because this harness requires a kernel.
    """
    k, d = components.shape
    k2, c, two = reasonings.shape
    assert k == k2 and two == 2

    # Lane-dense view of the reasonings so the store is not a masked
    # 2-of-128-lane partial write.
    reas2d = reasonings.reshape(k, c * two)

    bytes_accessed = 2 * (
        components.size * components.dtype.itemsize
        + reasonings.size * reasonings.dtype.itemsize
    )

    comp_out, reas_out2d = pl.pallas_call(
        _reasoning_components_kernel,
        out_shape=(
            jax.ShapeDtypeStruct((k, d), components.dtype),
            jax.ShapeDtypeStruct((k, c * two), reasonings.dtype),
        ),
        # Grid-less call; whole arrays as single VMEM blocks.
        in_specs=[
            pl.BlockSpec(memory_space=pltpu.MemorySpace.VMEM),
            pl.BlockSpec(memory_space=pltpu.MemorySpace.VMEM),
        ],
        out_specs=(
            pl.BlockSpec(memory_space=pltpu.MemorySpace.VMEM),
            pl.BlockSpec(memory_space=pltpu.MemorySpace.VMEM),
        ),
        cost_estimate=pl.CostEstimate(
            flops=0, transcendentals=0, bytes_accessed=bytes_accessed
        ),
    )(components, reas2d)

    return comp_out, reas_out2d.reshape(k, c, two)


if __name__ == "__main__":
    # Deterministic parameter initialization (synthetic, no checkpoint load).
    num_classes = 4
    num_components = 8
    dim = 32

    key = jax.random.PRNGKey(0)
    # components: as if produced by some ComponentsInitializer.generate(K)
    components = jax.random.normal(key, (num_components, dim), dtype=jnp.float32)
    # reasonings: ZeroReasoningsInitializer(num_classes, num_components) -> zeros (K, C, 2)
    reasonings = jnp.zeros((num_components, num_classes, 2), dtype=jnp.float32)

    comp_out, reas_out = reasoning_components_forward(components, reasonings)
    jax.block_until_ready((comp_out, reas_out))

    # Forward semantics check: identity on both tensors.
    assert comp_out.shape == (num_components, dim)
    assert reas_out.shape == (num_components, num_classes, 2)
    assert bool(jnp.array_equal(comp_out, components))
    assert bool(jnp.array_equal(reas_out, reasonings))

    print("KERNEL_OK")
</pallas_src>

<mosaic_0001>
module attributes {stable_mosaic.version = 11 : i64} {
  func.func @_reasoning_components_kernel(%arg0: memref<8x32xf32, #tpu.memory_space<vmem>>, %arg1: memref<8x8xf32, #tpu.memory_space<vmem>>, %arg2: memref<8x32xf32, #tpu.memory_space<vmem>>, %arg3: memref<8x8xf32, #tpu.memory_space<vmem>>) attributes {dimension_semantics = [], scalar_prefetch = 0 : i64, scratch_operands = 0 : i64, tpu.core_type = #tpu.core_type<tc>} {
    %c0 = arith.constant 0 : index
    %c0_0 = arith.constant 0 : index
    %0 = vector.load %arg0[%c0, %c0_0] : memref<8x32xf32, #tpu.memory_space<vmem>>, vector<8x32xf32>
    %c0_1 = arith.constant 0 : index
    %c0_2 = arith.constant 0 : index
    %1 = vector.load %arg2[%c0_1, %c0_2] : memref<8x32xf32, #tpu.memory_space<vmem>>, vector<8x32xf32>
    tpu.vector_store %arg2[%c0_1, %c0_2], %0 {strides = array<i32>} : memref<8x32xf32, #tpu.memory_space<vmem>>, vector<8x32xf32>,
    %c0_3 = arith.constant 0 : index
    %c0_4 = arith.constant 0 : index
    %2 = vector.load %arg1[%c0_3, %c0_4] : memref<8x8xf32, #tpu.memory_space<vmem>>, vector<8x8xf32>
    %c0_5 = arith.constant 0 : index
    %c0_6 = arith.constant 0 : index
    %3 = vector.load %arg3[%c0_5, %c0_6] : memref<8x8xf32, #tpu.memory_space<vmem>>, vector<8x8xf32>
    tpu.vector_store %arg3[%c0_5, %c0_6], %2 {strides = array<i32>} : memref<8x8xf32, #tpu.memory_space<vmem>>, vector<8x8xf32>,
    return
  }
}

</mosaic_0001>

<bundles_post_ra>
// kernel: tpu_custom_call.1
= control target key start
LH: loop header
LB: loop body
LE: loop exit
PB: predicated region body
PF: predicated region fallthrough
CT: control target
= control target key end

     0   :  { %9 = vsyncpa [#allocation3], 0  ;;  %s203_s0 = inlined_call_operand.hbm [shape: f32[8,32], index: 0, kind: input, shape index: {}]   ;;  %s204_s1 = inlined_call_operand.hbm [shape: f32[8,8], index: 1, kind: input, shape index: {}]   ;;  %s205_s2 = inlined_call_operand.hbm [shape: f32[8,32], index: 2, kind: output, shape index: {0}]   ;;  %s206_s3 = inlined_call_operand.hbm [shape: f32[8,8], index: 3, kind: output, shape index: {1}]  }
   0x1   :  { %10 = vsyncpa [#allocation6], 0 }
   0x2   :  { %11 = vsyncpa [#allocation4], 0 }
   0x3   :  { %12 = vsyncpa [#allocation9], 0  ;;  %s167_s12 = smov [#allocation2]   ;;  %s168_s14 = smov [#allocation5]  }
   0x4   :  { %s19_s13 = sshll.u32 %s167_s12, 4  ;;  %s29_s15 = sshll.u32 %s168_s14, 4  ;;  %s20_s13 = int_to_ptr.vmem [resolvable:$true] %s19_s13  ;;  %s30_s15 = int_to_ptr.vmem [resolvable:$true] %s29_s15 }
   0x5   :  { %s87_s16 = scalar_lea.vmem %s20_s13, 128  ;;  %p92_p1 = scmp.lt.s32.totalorder %s20_s13, %s20_s13 }
   0x6   :  { %p88_p0 = scmp.ne.s32.totalorder %s20_s13, %s87_s16  ;;  %p93_p2 = scmp.lt.s32.totalorder %s87_s16, %s87_s16 }
   0x8   :  { %p94_p3 = por %p93_p2, %p92_p1 }
   0xa   :  { %p95_p4 = pnand %p94_p3, %p88_p0 }
   0xc   :  { %98 = shalt.err (!%p95_p4)
}
   0xd   :  { %22 = dma.hbm_to_vmem [thread:$0]  %s203_s0, 128, %s20_s13, [#allocation3]  }
   0xe   :  { %s107_s19 = scalar_lea.vmem %s30_s15, 128  ;;  %p112_p6 = scmp.lt.s32.totalorder %s30_s15, %s30_s15 }
   0xf   :  { %p108_p5 = scmp.ne.s32.totalorder %s30_s15, %s107_s19  ;;  %p113_p7 = scmp.lt.s32.totalorder %s107_s19, %s107_s19 }
  0x11   :  { %p114_p8 = por %p113_p7, %p112_p6 }
  0x13   :  { %p115_p9 = pnand %p114_p8, %p108_p5 }
  0x15   :  { %118 = shalt.err (!%p115_p9)
}
  0x16   :  { %32 = dma.hbm_to_vmem [thread:$0]  %s204_s1, 128, %s30_s15, [#allocation6]  }
  0x17   :  { %159 = dma.done.wait [#allocation3], 128  }
  0x18   :  { %160 = vsyncadd [#allocation3], 4294967168 }
  0x19   :  { %161 = dma.done.wait [#allocation6], 128  }
  0x1a   :  { %162 = vsyncadd [#allocation6], 4294967168  ;;  %s169_s22 = smov [#allocation7]   ;;  %s170_s24 = smov [#allocation8]   ;;  %vm40_vm0 = vcmask 261120   ;;  %vm43_vm1 = vcmask 64512  }
  0x1b   :  { %s51_s23 = sshll.u32 %s169_s22, 4  ;;  %s61_s25 = sshll.u32 %s170_s24, 4  ;;  %v39_v0 = vld [vmem:[#allocation2] sm:$0xff]  ;;  %v42_v1 = vld [vmem:[#allocation5] sm:$0xff]  ;;  %s52_s23 = int_to_ptr.vmem [resolvable:$true] %s51_s23  ;;  %s62_s25 = int_to_ptr.vmem [resolvable:$true] %s61_s25 }
  0x1c   :  { %41 = vst.msk [vmem:[#allocation7] sm:$0xff] %vm40_vm0, %v39_v0  ;;  %s119_s0 = scalar_lea.vmem %s52_s23, 128  ;;  %p124_p11 = scmp.lt.s32.totalorder %s52_s23, %s52_s23 }
  0x1d   :  { %44 = vst.msk [vmem:[#allocation8] sm:$0xff] %vm43_vm1, %v42_v1  ;;  %p120_p10 = scmp.ne.s32.totalorder %s52_s23, %s119_s0  ;;  %p125_p12 = scmp.lt.s32.totalorder %s119_s0, %s119_s0 }
  0x1f   :  { %p126_p13 = por %p125_p12, %p124_p11 }
  0x21   :  { %p127_p0 = pnand %p126_p13, %p120_p10 }
  0x23   :  { %130 = shalt.err (!%p127_p0)
}
  0x24   :  { %54 = dma.vmem_to_hbm [thread:$0]  %s52_s23, 128, %s205_s2, [#allocation4]  }
  0x25   :  { %s139_s27 = scalar_lea.vmem %s62_s25, 128  ;;  %p144_p2 = scmp.lt.s32.totalorder %s62_s25, %s62_s25 }
  0x26   :  { %p140_p1 = scmp.ne.s32.totalorder %s62_s25, %s139_s27  ;;  %p145_p3 = scmp.lt.s32.totalorder %s139_s27, %s139_s27 }
  0x28   :  { %p146_p4 = por %p145_p3, %p144_p2 }
  0x2a   :  { %p147_p5 = pnand %p146_p4, %p140_p1 }
  0x2c   :  { %150 = shalt.err (!%p147_p5)
}
  0x2d   :  { %64 = dma.vmem_to_hbm [thread:$0]  %s62_s25, 128, %s206_s3, [#allocation9]  }
  0x2e   :  { %163 = dma.done.wait [#allocation4], 128  }
  0x2f   :  { %164 = vsyncadd [#allocation4], 4294967168 }
  0x30   :  { %165 = dma.done.wait [#allocation9], 128  }
  0x31   :  { %166 = vsyncadd [#allocation9], 4294967168 }
  0x32   :  { %71 = vsyncpa [#allocation3], 1 }
  0x33   :  { %72 = vsyncpa [#allocation6], 1 }
  0x34   :  { %73 = vsyncpa [#allocation4], 1 }
  0x35   :  { %74 = vsyncpa [#allocation9], 1 }

</bundles_post_ra>
